<compile_context>
chip_gen: v7x
topology: tpu7x:2x2x1
jax: 0.10.0
libtpu: 0.0.40
codegen_flags: <defaults>
</compile_context>

<pallas_src>
import jax
import jax.numpy as jnp
from jax import lax
from jax.experimental import pallas as pl
from jax.experimental.pallas import tpu as pltpu


def _round_up(x: int, m: int) -> int:
    return ((x + m - 1) // m) * m


def _make_kernel(num_words: int, w_tile: int, f_tile: int, needs_mask: bool):
    inv_n = 1.0 / float(num_words)
    n_sub = w_tile // 8                      # 8-word sublane groups per block
    unroll = max(1, min(8, n_sub))

    def kernel(x_ref, o_ref, acc_ref):
        k = pl.program_id(1)
        n_k = pl.num_programs(1)

        @pl.when(k == 0)
        def _():
            # Accumulator is a tiny (8, f_tile) block — zero-init cost is
            # negligible relative to the streamed input.
            acc_ref[...] = jnp.zeros_like(acc_ref)

        def run(masked: bool):
            if masked:
                # Hoisted out of the loop body; only built on the last step.
                row_iota = lax.broadcasted_iota(jnp.int32, (8, f_tile), 0)

            def body(c, acc):
                start = pl.multiple_of(c * 8, 8)
                sl = x_ref[pl.ds(start, 8), :].astype(jnp.float32)
                if masked:
                    # rows valid iff (k*w_tile + start + row) < num_words
                    limit = num_words - k * w_tile - start
                    sl = jnp.where(row_iota < limit, sl, 0.0)
                return acc + sl

            acc_ref[...] = lax.fori_loop(0, n_sub, body, acc_ref[...],
                                         unroll=unroll)

        if needs_mask:
            # Only the final reduction step pays the masking cost.
            @pl.when(k != n_k - 1)
            def _():
                run(False)

            @pl.when(k == n_k - 1)
            def _():
                run(True)
        else:
            run(False)

        @pl.when(k == n_k - 1)
        def _():
            total = jnp.sum(acc_ref[...], axis=0, keepdims=True)  # (1, f_tile)
            o_ref[...] = (total * inv_n).astype(o_ref.dtype)

    return kernel


def bag_of_words(x: jax.Array) -> jax.Array:
    """Mean over axis 0 of a (num_words, batch, embedding) tensor."""
    num_words, batch, emb = x.shape
    F = batch * emb
    itemsize = jnp.dtype(x.dtype).itemsize

    # Lane-dense layout: flatten (batch, emb) -> F (free, row-major).
    x2 = x.reshape(num_words, F)

    # Feature (lane) tile: multiple of 128, or the full dim when tiny.
    if F <= 128:
        f_tile = F
    else:
        f_tile = min(1024, _round_up(F, 128))
        # Guarantee >= 2 parallel feature tiles when possible so both
        # TensorCores on dual-core chips (v7x) get work.
        if pl.cdiv(F, f_tile) < 2 and F > 256:
            f_tile = _round_up(pl.cdiv(F, 2), 128)

    # Word tile: multiple of 8 sublanes, sized against the *lane-padded*
    # VMEM footprint for a ~4 MiB input block.
    target_block_bytes = 4 * 1024 * 1024
    lane_padded = _round_up(f_tile, 128)
    w_by_vmem = max(8, (target_block_bytes // (lane_padded * itemsize)) // 8 * 8)
    w_cap = _round_up(num_words, 8)
    w_tile = max(8, min(w_by_vmem, w_cap, 8192))

    needs_mask = (num_words % w_tile) != 0
    grid = (pl.cdiv(F, f_tile), pl.cdiv(num_words, w_tile))

    kernel = _make_kernel(num_words, w_tile, f_tile, needs_mask)

    out_flat = pl.pallas_call(
        kernel,
        out_shape=jax.ShapeDtypeStruct((1, F), x.dtype),
        grid_spec=pltpu.PrefetchScalarGridSpec(
            num_scalar_prefetch=0,
            grid=grid,
            in_specs=[
                pl.BlockSpec((w_tile, f_tile), lambda j, k: (k, j)),
            ],
            out_specs=pl.BlockSpec((1, f_tile), lambda j, k: (0, j)),
            scratch_shapes=[pltpu.VMEM((8, f_tile), jnp.float32)],
        ),
        compiler_params=pltpu.CompilerParams(
            # feature tiles are independent -> parallel (megacore / 2 TCs);
            # word axis is the reduction -> arbitrary, kept last.
            dimension_semantics=("parallel", "arbitrary"),
            vmem_limit_bytes=32 * 1024 * 1024,
        ),
    )(x2)

    return out_flat.reshape(batch, emb)


if __name__ == "__main__":
    # BagOfWords has no parameters — nothing to initialize.
    key = jax.random.PRNGKey(0)
    num_words, batch, emb = 8, 4, 128
    x = jax.random.normal(key, (num_words, batch, emb), dtype=jnp.float32)

    out = bag_of_words(x)
    out = jax.block_until_ready(out)

    ref = jnp.sum(x, axis=0) / num_words
    assert out.shape == (batch, emb)
    assert jnp.allclose(out, ref, atol=1e-5, rtol=1e-5)
    print("KERNEL_OK")
</pallas_src>

<mosaic_0001>
module attributes {stable_mosaic.version = 11 : i64} {
  func.func @kernel(%arg0: i32, %arg1: i32, %arg2: memref<8x256xf32, #tpu.memory_space<vmem>>, %arg3: memref<1x256xf32, #tpu.memory_space<vmem>>, %arg4: memref<8x256xf32, #tpu.memory_space<vmem>>) attributes {dimension_semantics = [#tpu.dimension_semantics<parallel>, #tpu.dimension_semantics<arbitrary>], iteration_bounds = array<i64: 2, 1>, scalar_prefetch = 0 : i64, scratch_operands = 1 : i64, tpu.core_type = #tpu.core_type<tc>, window_params = [{transform_indices = @transform_0, window_bounds = array<i64: 8, 256>}, {transform_indices = @transform_1, window_bounds = array<i64: 1, 256>}]} {
    %c0_i32 = arith.constant 0 : i32
    %0 = arith.cmpi eq, %arg1, %c0_i32 : i32
    %1 = arith.extui %0 : i1 to i32
    %c0_i32_0 = arith.constant 0 : i32
    %2 = arith.cmpi ne, %1, %c0_i32_0 : i32
    scf.if %2 {
      %cst = arith.constant 0.000000e+00 : f32
      %13 = vector.broadcast %cst : f32 to vector<8x256xf32>
      %c0_8 = arith.constant 0 : index
      %c0_9 = arith.constant 0 : index
      %14 = vector.load %arg4[%c0_8, %c0_9] : memref<8x256xf32, #tpu.memory_space<vmem>>, vector<8x256xf32>
      tpu.vector_store %arg4[%c0_8, %c0_9], %13 {strides = array<i32>} : memref<8x256xf32, #tpu.memory_space<vmem>>, vector<8x256xf32>,
    } else {
    }
    %c0 = arith.constant 0 : index
    %c0_1 = arith.constant 0 : index
    %3 = vector.load %arg4[%c0, %c0_1] : memref<8x256xf32, #tpu.memory_space<vmem>>, vector<8x256xf32>
    %c0_i32_2 = arith.constant 0 : i32
    %c8_i32 = arith.constant 8 : i32
    %4 = arith.muli %c0_i32_2, %c8_i32 : i32
    %5 = tpu.assume_multiple %4, 8 : i32
    %6 = arith.index_cast %5 : i32 to index
    %c0_3 = arith.constant 0 : index
    %7 = vector.load %arg2[%6, %c0_3] : memref<8x256xf32, #tpu.memory_space<vmem>>, vector<8x256xf32>
    %8 = arith.addf %3, %7 : vector<8x256xf32>
    %c1_i32 = arith.constant 1 : i32
    %c0_4 = arith.constant 0 : index
    %c0_5 = arith.constant 0 : index
    %9 = vector.load %arg4[%c0_4, %c0_5] : memref<8x256xf32, #tpu.memory_space<vmem>>, vector<8x256xf32>
    tpu.vector_store %arg4[%c0_4, %c0_5], %8 {strides = array<i32>} : memref<8x256xf32, #tpu.memory_space<vmem>>, vector<8x256xf32>,
    %c0_i32_6 = arith.constant 0 : i32
    %10 = arith.cmpi eq, %arg1, %c0_i32_6 : i32
    %11 = arith.extui %10 : i1 to i32
    %c0_i32_7 = arith.constant 0 : i32
    %12 = arith.cmpi ne, %11, %c0_i32_7 : i32
    scf.if %12 {
      %c0_8 = arith.constant 0 : index
      %c0_9 = arith.constant 0 : index
      %13 = vector.load %arg4[%c0_8, %c0_9] : memref<8x256xf32, #tpu.memory_space<vmem>>, vector<8x256xf32>
      %cst = arith.constant dense<0.000000e+00> : vector<256xf32>
      %14 = vector.multi_reduction <add>, %13, %cst [0] : vector<8x256xf32> to vector<256xf32>
      %15 = vector.shape_cast %14 : vector<256xf32> to vector<1x256xf32>
      %cst_10 = arith.constant 1.250000e-01 : f32
      %16 = vector.broadcast %cst_10 : f32 to vector<1x256xf32>
      %17 = arith.mulf %15, %16 : vector<1x256xf32>
      %c0_11 = arith.constant 0 : index
      %c0_12 = arith.constant 0 : index
      %18 = vector.load %arg3[%c0_11, %c0_12] : memref<1x256xf32, #tpu.memory_space<vmem>>, vector<1x256xf32>
      tpu.vector_store %arg3[%c0_11, %c0_12], %17 {strides = array<i32>} : memref<1x256xf32, #tpu.memory_space<vmem>>, vector<1x256xf32>,
    } else {
    }
    return
  }
  func.func @transform_0(%arg0: i32, %arg1: i32) -> (i32, i32) {
    %c0_i32 = arith.constant 0 : i32
    return %arg1, %arg0 : i32, i32
  }
  func.func @transform_1(%arg0: i32, %arg1: i32) -> (i32, i32) {
    %c0_i32 = arith.constant 0 : i32
    %c0_i32_0 = arith.constant 0 : i32
    return %c0_i32, %arg0 : i32, i32
  }
}

</mosaic_0001>

<bundles_post_ra>
// kernel: tpu_custom_call.1
= control target key start
LH: loop header
LB: loop body
LE: loop exit
PB: predicated region body
PF: predicated region fallthrough
CT: control target
= control target key end

     0   :  { %6 = vsyncpa [#allocation4], 0  ;;  %s686_s0 = inlined_call_operand.hbm [shape: f32[8,512], index: 0, kind: input, shape index: {}]   ;;  %s687_s1 = inlined_call_operand.hbm [shape: f32[1,512], index: 1, kind: output, shape index: {}]  }
   0x1   :  { %8 = vsyncpa [#allocation4 + $0x1], 0 }
   0x2   :  { %9 = vsyncpa [#allocation5], 0 }
   0x3   :  { %11 = vsyncpa [#allocation5 + $0x1], 0  ;;  %s513_s6 = smov 0   ;;  %s515_s7 = smov 0  }
   0x4   :  { %s517_s8 = smov 0   ;;  %s519_s9 = smov 0  }
   0x5   :  { %s521_s10 = smov 0   ;;  %s523_s11 = smov 0  }
   0x6 LB: > { %s306_s12 = sadd.s32 4294967295, %s498_s11   ;;  %s307_s13 = sadd.s32 4294967294, %s498_s11   ;;  %s498_s11 = sphi %s523_s11, %s17_s11   ;;  %s494_s10 = sphi %s521_s10, %s703_s10   ;;  %s490_s9 = sphi %s519_s9, %s702_s9   ;;  %s486_s8 = sphi %s517_s8, %s701_s8   ;;  %s482_s7 = sphi %s515_s7, %s700_s7   ;;  %s478_s6 = sphi %s513_s6, %s699_s6  }
   0x7   : > { %s29_s14 = sadd.s32 1, %s494_s10  ;;  %s38_s15 = sadd.s32 1, %s486_s8 }
   0x8   : > { %p31_p0 = scmp.ge.s32.totalorder %s29_s14, 2  ;;  %p45_p1 = scmp.ne.s32.totalorder %s486_s8, %s482_s7 }
   0x9   : > { %p46_p2 = scmp.eq.s32.totalorder %s498_s11, 0  ;;  %p51_p3 = scmp.ne.s32.totalorder %s482_s7, %s478_s6 }
   0xa   : > { %s705_s14 = smov (%p31_p0, %s29_s14), 0  ;;  %p52_p5 = scmp.eq.s32.totalorder %s306_s12, 0 }
   0xb   : > { %p554_p4 = por %p46_p2, %p45_p1  ;;  %s34_s17 = ssub.s32 %s494_s10, %s705_s14 }
   0xc   : > { %p75_p6 = scmp.eq.s32.totalorder %s306_s12, 1  ;;  %p36_p7 = scmp.eq.s32.totalorder %s34_s17, 0 }
   0xd   : > { %p560_p8 = por %p52_p5, %p51_p3  ;;  %p81_p10 = scmp.eq.s32.totalorder %s307_s13, 1 }
   0xe   : > { %p564_p9 = por %p75_p6, %p45_p1  ;;  %p335_p13 = scmp.lt.s32.totalorder %s498_s11, 2 }
   0xf   : > { %s569_s20 = scalar_select %p36_p7, %s486_s8, %s38_s15  }
  0x10   : > { %s691_s19 = scalar_select %p564_p9, 1, 0 }
  0x11   : > { %p571_p11 = por %p81_p10, %p51_p3  ;;  %s101_s22 = sand.u32 1, %s486_s8  }
  0x12   : > { %s310_s23 = sshll.u32 %s101_s22, 4  ;;  %s321_s24 = sshll.u32 %s494_s10, 8 }
  0x13   : > { %s692_s21 = scalar_select %p571_p11, 1, 0 }
  0x14   : > { %s582_s27 = scalar_lea.hbm %s686_s0, %s321_s24  ;;  %s105_s28 = scalar_lea.vmem [#allocation3], %s310_s23 }
  0x15   : > { %s115_s29 = sshll.u32 %s105_s28, 4  ;;  %p588_p0 = pnand %p335_p13, %p554_p4  ;;  %s584_s29 = int_to_ptr.vmem [resolvable:$true] %s115_s29 }
  0x16   : > { %s102_s2 = scalar_lea.sflag [#allocation4], %s101_s22  ;;  %s386_s3 = scalar_lea.hbm %s582_s27, 256 }
  0x17   : > { %p387_p3 = scmp.ne.s32.totalorder %s582_s27, %s386_s3  ;;  %p388_p5 = pneg %p588_p0 }
  0x18   : > { %s391_s12 = scalar_lea.hbm %s686_s0, 512  ;;  %p392_p4 = scmp.lt.u32.totalorder %s582_s27, %s686_s0 }
  0x19   : > { %p389_p6 = pnand %p388_p5, %p387_p3  ;;  %p393_p10 = scmp.lt.u32.totalorder %s391_s12, %s386_s3 }
  0x1a   : > { %p395_p12 = scmp.lt.u32.totalorder %s386_s3, %s582_s27 }
  0x1b   : > { %p390_p7 = pneg %p389_p6  ;;  %p394_p13 = por %p393_p10, %p392_p4 }
  0x1d   : > { %p396_p1 = por %p395_p12, %p394_p13 }
  0x1f   : > { %p397_p2 = pnand %p396_p1, %p390_p7 }
  0x21   : > { %400 = shalt.err (!%p397_p2)
}
  0x22   : > { %s401_s16 = scalar_lea.vmem %s584_s29, 256  ;;  %s500_s17 = smov [#allocation3]  }
  0x23   : > { %p402_p3 = scmp.ne.s32.totalorder %s584_s29, %s401_s16  ;;  %s406_s22 = sshll.u32 %s500_s17, 4  ;;  %s407_s22 = int_to_ptr.vmem [resolvable:$false] %s406_s22 }
  0x24   : > { %s408_s23 = scalar_lea.vmem %s407_s22, 512  ;;  %p409_p9 = scmp.lt.s32.totalorder %s584_s29, %s407_s22 }
  0x25   : > { %p404_p6 = pnand %p402_p3, %p388_p5  ;;  %p410_p4 = scmp.lt.s32.totalorder %s408_s23, %s401_s16 }
  0x27   : > { %p405_p11 = pneg %p404_p6  ;;  %p411_p10 = por %p410_p4, %p409_p9 }
  0x29   : > { %p412_p12 = pnand %p411_p10, %p405_p11 }
  0x2b   : > { %415 = shalt.err (!%p412_p12)
}
  0x2c   : > { %330 = dma.hbm_to_vmem [thread:$0]  (!%p588_p0), %s582_s27, 256, %s584_s29, %s102_s2  }
  0x2d   : > { %p694_p1 = scmp.lt.s32.totalorder %s498_s11, 3  ;;  %p695_p2 = scmp.ge.s32.totalorder %s498_s11, 1 }
  0x2f   : > { %p121_p5 = pnand %p695_p2, %p694_p1 }
  0x30   : > { %s624_s24 = sand.u32 (!%p121_p5), 1, %s482_s7  }
  0x31   : > { %124 = sbr.rel (%p121_p5) target bundleno = 92 (0x5c), region = 24  ;;  %s314_s25 = sshll.u32 (!%p121_p5), %s624_s24, 4 }
  0x32   : > { %s127_s26 = scalar_lea.sflag (!%p121_p5), [#allocation4], %s624_s24  ;;  %s130_s28 = scalar_lea.vmem (!%p121_p5), [#allocation3], %s314_s25 }
  0x38   : > { %469 = dma.done.wait (%p560_p8), %s127_s26, 256  }
  0x39   : > { %471 = vsyncadd (%p560_p8), %s127_s26, 4294967040  ;;  %v162_v0 = vld [vmem:[%s130_s28] sm:$0xff]  ;;  %v163_v1 = vld [vmem:[%s130_s28 + $0x8] sm:$0xff]  ;;  %v501_v8 = vmov 1966171168   ;;  %v193_v10 = vlaneseq  ;;  %s315_s18 = sshll.u32 %s624_s24, 1 }
  0x3a   : > { %v173_v2 = vrot.slane %v162_v0, 4  ;;  %v179_v3 = vrot.slane %v163_v1, 4  ;;  %v191_v9 = vunpack.c.l.s4 %v501_v8  ;;  %s148_s27 = scalar_lea.vmem [#allocation6], %s315_s18  ;;  %s322_s30 = sshll.u32 %s490_s9, 5 }
  0x3b   : > { %v194_v16 = vshrl.u32 %v193_v10, 7  ;;  %s225_s29 = sshll.u32 %s148_s27, 4  ;;  %vm207_vm0 = vcmp.lt.s32.totalorder %v193_v10, 256  ;;  %s639_s4 = scalar_lea.hbm %s687_s1, %s322_s30  ;;  %s634_s29 = int_to_ptr.vmem [resolvable:$true] %s225_s29 }
  0x3c   : > { %v174_v4 = vadd.f32 %v173_v2, %v162_v0  ;;  %v180_v5 = vadd.f32 %v179_v3, %v163_v1  ;;  %v192_v15 = vunpack.c.0.s8 %v191_v9  ;;  %s211_s5 = scalar_lea.sflag [#allocation5], %s624_s24  ;;  %s416_s12 = scalar_lea.vmem %s634_s29, 32 }
  0x3d   : > { %p417_p8 = scmp.ne.s32.totalorder %s634_s29, %s416_s12  ;;  %p696_p9 = scmp.ne.s32.totalorder %s691_s19, 0 }
  0x3e   : > { %v175_v6 = vrot.slane %v174_v4, 2  ;;  %v181_v7 = vrot.slane %v180_v5, 2  ;;  %v195_v21 = vsub.s32 %v192_v15, %v194_v16  ;;  %s502_s9 = smov [#allocation6]  }
  0x3f   : > { %p418_p11 = pnand %p417_p8, %p696_p9  ;;  %s420_s13 = sshll.u32 %s502_s9, 4  ;;  %s421_s13 = int_to_ptr.vmem [resolvable:$false] %s420_s13 }
  0x40   : > { %v176_v11 = vadd.f32 %v175_v6, %v174_v4  ;;  %v182_v12 = vadd.f32 %v181_v7, %v180_v5  ;;  %s422_s15 = scalar_lea.vmem %s421_s13, 64  ;;  %p423_p7 = scmp.lt.s32.totalorder %s634_s29, %s421_s13 }
  0x41   : > { %p419_p0 = pneg %p418_p11  ;;  %p424_p13 = scmp.lt.s32.totalorder %s422_s15, %s416_s12 }
  0x42   : > { %v177_v13 = vrot.slane %v176_v11, 1  ;;  %v183_v14 = vrot.slane %v182_v12, 1 }
  0x43   : > { %p425_p3 = por %p424_p13, %p423_p7 }
  0x44   : > { %v178_v17 = vadd.f32 %v177_v13, %v176_v11  ;;  %v184_v18 = vadd.f32 %v183_v14, %v182_v12 }
  0x45   : > { %p426_p6 = pnand %p425_p3, %p419_p0 }
  0x46   : > { %v185_v19 = vmul.f32 0.125, %v178_v17  ;;  %v186_v20 = vmul.f32 0.125, %v184_v18 }
  0x48   : > { %v189_v22 = vcombine.low %v185_v19, %v186_v20 }
  0x4a   : > { %v196_v23 = vrot.slane %v189_v22, %v195_v21 }
  0x4c   : > { %v203_v24 = vrot.slane %v196_v23, %v195_v21 }
  0x4e   : > { %209 = vst.msk [vmem:[%s148_s27] sm:$0x3] %vm207_vm0, %v203_v24 }
  0x4f   : > { %429 = shalt.err (!%p426_p6)
}
  0x50   : > { %s430_s16 = scalar_lea.hbm %s639_s4, 32  ;;  %s434_s23 = scalar_lea.hbm %s687_s1, 64 }
  0x51   : > { %p431_p4 = scmp.ne.s32.totalorder %s639_s4, %s430_s16  ;;  %p435_p1 = scmp.lt.u32.totalorder %s639_s4, %s687_s1 }
  0x52   : > { %p436_p2 = scmp.lt.u32.totalorder %s434_s23, %s430_s16  ;;  %p438_p8 = scmp.lt.u32.totalorder %s430_s16, %s639_s4 }
  0x53   : > { %p432_p10 = pnand %p431_p4, %p696_p9 }
  0x54   : > { %p437_p5 = por %p436_p2, %p435_p1 }
  0x55   : > { %p433_p12 = pneg %p432_p10 }
  0x56   : > { %p439_p11 = por %p438_p8, %p437_p5 }
  0x58   : > { %p440_p0 = pnand %p439_p11, %p433_p12 }
  0x5a   : > { %443 = shalt.err (!%p440_p0)
}
  0x5b   : > { %325 = dma.vmem_to_hbm [thread:$0]  (%p696_p9), %s634_s29, 32, %s639_s4, %s211_s5  }
  0x5c PF: > { %s237_s26 = sand.u32 1, %s478_s6   ;;  %p697_p7 = scmp.ne.s32.totalorder %s692_s21, 0 }
  0x5d   : > { %p698_p13 = scmp.ge.s32.totalorder %s498_s11, 2  ;;  %s238_s28 = scalar_lea.sflag [#allocation5], %s237_s26 }
  0x5f   : > { %p332_p3 = pnand %p698_p13, %p697_p7 }
  0x61   : > { %473 = dma.done.wait (!%p332_p3), %s238_s28, 32  }
  0x62   : > { %475 = vsyncadd (!%p332_p3), %s238_s28, 4294967264  ;;  %s17_s11 = sadd.s32 1, %s498_s11   ;;  %s699_s6 = smov %s482_s7 }
  0x63   : > { %p14_p6 = scmp.ge.s32.totalorder %s17_s11, 4   ;;  %s700_s7 = smov %s486_s8 }
  0x64   : > { %s701_s8 = smov %s569_s20  ;;  %s702_s9 = smov %s494_s10 }
  0x65   : > { %s703_s10 = smov %s705_s14  ;;  %16 = sbr.rel (!%p14_p6) target bundleno = 6 (0x6), region = 78 }
  0x6c   :  { %243 = vsyncpa [#allocation4], 1 }
  0x6d   :  { %245 = vsyncpa [#allocation4 + $0x1], 1 }
  0x6e   :  { %246 = vsyncpa [#allocation5], 1 }
  0x6f   :  { %248 = vsyncpa [#allocation5 + $0x1], 1 }

</bundles_post_ra>
